<compile_context>
chip_gen: v7x
topology: tpu7x:2x2x1
jax: 0.10.0
libtpu: 0.0.40
codegen_flags: <defaults>
</compile_context>

<pallas_src>
import jax
import jax.numpy as jnp
from jax import lax
from jax.experimental import pallas as pl
from jax.experimental.pallas import tpu as pltpu


_BLOCK_BUDGET_BYTES = 4 << 20   # per output buffer; x2 double-buffer = 8 MiB
_DENSE_MAX_BYTES = 1 << 20      # lane-dense slab path only for tables <= 1 MiB


# ----------------------------------------------------------------------------
# Kernels
# ----------------------------------------------------------------------------
def _rotary_kernel_dense(a_ref, b_ref, out_ref):
    """Lane-dense layout: out is a (R, 128) slab, R = seq * dim / 128.

    Slab element (r, c) corresponds to seq row t = r*k + c//dim and emb column
    c % dim, so its value is t * scale[c % dim] = r * a[c] + b[c] with
      a[c] = k * scale[c % dim]
      b[c] = (c // dim) * scale[c % dim]
    both precomputed host-side.  Kernel = one iota, one cast, one fused
    mul/add, one full-width unmasked store.
    """
    tile_r, c = out_ref.shape
    r0 = pl.program_id(0) * tile_r
    rows = (lax.broadcasted_iota(jnp.int32, (tile_r, c), 0) + r0).astype(jnp.float32)
    out_ref[...] = rows * a_ref[...] + b_ref[...]


def _rotary_kernel_simple(scale_ref, out_ref):
    """Natural layout: out block is (tile_seq, dim).

    scale_ref: (1, dim) f32 = concat(inv_freq, inv_freq)
    """
    tile_seq, dim = out_ref.shape
    r0 = pl.program_id(0) * tile_seq
    t = (lax.broadcasted_iota(jnp.int32, (tile_seq, dim), 0) + r0).astype(jnp.float32)
    out_ref[...] = t * scale_ref[...]


# ----------------------------------------------------------------------------
# Wrapper
# ----------------------------------------------------------------------------
def _round_up(x: int, m: int) -> int:
    return -(-x // m) * m


def _pick_tile(rows: int, row_bytes: int) -> int:
    """Rows per output block.

    * multiple of 8 (or the full extent) so the block shape is (8,128)-legal,
    * 2x double-buffered block stays within _BLOCK_BUDGET_BYTES,
    * at least 2 grid steps whenever rows > 8 so the "parallel" grid axis can
      be sharded across v7x's two TensorCores (negligible cost on v5e/v6e).
    """
    if rows <= 8:
        return rows                                   # full extent -> always legal
    budget_rows = max(8, (_BLOCK_BUDGET_BYTES // row_bytes) // 8 * 8)
    half = _round_up(-(-rows // 2), 8)                # ceil(rows/2), 8-aligned
    return max(8, min(budget_rows, half))


def _compiler_params(block_bytes: int) -> pltpu.CompilerParams:
    # Cover 2x the output block (double buffering) + the tiny (1, lanes) inputs
    # + headroom; clamp so we never ask for more than is sane on v7x (64 MiB).
    vmem_limit = min(48 << 20, max(16 << 20, 2 * block_bytes + (2 << 20)))
    return pltpu.CompilerParams(
        dimension_semantics=("parallel",),
        vmem_limit_bytes=vmem_limit,
    )


def rotary_embedding(max_seq_len: int, dim: int) -> jnp.ndarray:
    """Reproduces RotaryEmbedding.forward(max_seq_len) -> (1, 1, seq, dim) f32."""
    # Deterministic "buffer" init, exactly as in __init__.
    inv_freq = 1.0 / (10000.0 ** (jnp.arange(0, dim, 2, dtype=jnp.float32) / dim))
    inv_full = jnp.concatenate([inv_freq, inv_freq])  # (dim,) concat done host-side

    total_bytes = max_seq_len * dim * 4
    use_dense = (
        dim < 128
        and 128 % dim == 0
        and (max_seq_len * dim) % 128 == 0
        and total_bytes <= _DENSE_MAX_BYTES           # keep external reshape cheap
    )

    if use_dense:
        k = 128 // dim
        c = 128
        r = (max_seq_len * dim) // c                  # slab rows
        scale = jnp.tile(inv_full, k)                 # (128,)
        a = (float(k) * scale).reshape(1, c)
        b = ((jnp.arange(c) // dim).astype(jnp.float32) * scale).reshape(1, c)
        tile_r = _pick_tile(r, c * 4)
        block_bytes = tile_r * c * 4
        slab = pl.pallas_call(
            _rotary_kernel_dense,
            out_shape=jax.ShapeDtypeStruct((r, c), jnp.float32),
            grid=(pl.cdiv(r, tile_r),),
            in_specs=[pl.BlockSpec((1, c), lambda i: (0, 0)),
                      pl.BlockSpec((1, c), lambda i: (0, 0))],
            out_specs=pl.BlockSpec((tile_r, c), lambda i: (i, 0)),
            compiler_params=_compiler_params(block_bytes),
        )(a, b)
        emb = slab.reshape(max_seq_len, dim)          # small table -> cheap relayout
    else:
        scale = inv_full.reshape(1, dim)
        tile_seq = _pick_tile(max_seq_len, dim * 4)
        block_bytes = tile_seq * dim * 4
        emb = pl.pallas_call(
            _rotary_kernel_simple,
            out_shape=jax.ShapeDtypeStruct((max_seq_len, dim), jnp.float32),
            grid=(pl.cdiv(max_seq_len, tile_seq),),
            in_specs=[pl.BlockSpec((1, dim), lambda i: (0, 0))],
            out_specs=pl.BlockSpec((tile_seq, dim), lambda i: (i, 0)),
            compiler_params=_compiler_params(block_bytes),
        )(scale)

    # Glue: '() () n d'
    return emb.reshape(1, 1, max_seq_len, dim)


def _reference(max_seq_len: int, dim: int) -> jnp.ndarray:
    inv_freq = 1.0 / (10000.0 ** (jnp.arange(0, dim, 2, dtype=jnp.float32) / dim))
    t = jnp.arange(max_seq_len, dtype=jnp.float32)
    freqs = jnp.einsum("i,j->ij", t, inv_freq)
    return jnp.concatenate([freqs, freqs], axis=-1).reshape(1, 1, max_seq_len, dim)


if __name__ == "__main__":
    key = jax.random.PRNGKey(0)  # no random inputs needed; kept for convention

    def _check(seq, dim, tag):
        out = jax.block_until_ready(rotary_embedding(seq, dim))
        ref = _reference(seq, dim)
        assert out.shape == (1, 1, seq, dim), tag
        assert out.dtype == jnp.float32, tag
        assert jnp.allclose(out, ref, atol=1e-4, rtol=1e-6), f"mismatch vs reference ({tag})"

    # Primary small-shape check (seq=8, dim=32) -> dense path, single block.
    _check(8, 32, "dense single-block")
    # Dense path with a multi-step grid (1 MiB table, slab rows=2048, grid=2).
    _check(4096, 64, "dense multi-block")
    # Large dim<128 table -> natural-layout path (no external relayout pass).
    _check(8192, 64, "simple path, dim<128")
    # dim >= 128 path with a non-divisible seq (ragged last block).
    _check(1000, 128, "simple path, ragged seq")
    # dim >= 128, larger dim.
    _check(1024, 256, "simple path, dim=256")

    print("KERNEL_OK")
</pallas_src>

<mosaic_0001>
module attributes {stable_mosaic.version = 11 : i64} {
  func.func @_rotary_kernel_dense(%arg0: i32, %arg1: memref<1x128xf32, #tpu.memory_space<vmem>>, %arg2: memref<1x128xf32, #tpu.memory_space<vmem>>, %arg3: memref<2x128xf32, #tpu.memory_space<vmem>>) attributes {dimension_semantics = [#tpu.dimension_semantics<parallel>], iteration_bounds = array<i64: 1>, scalar_prefetch = 0 : i64, scratch_operands = 0 : i64, tpu.core_type = #tpu.core_type<tc>, window_params = [{pipeline_mode = #tpu.pipeline_mode<synchronous>, transform_indices = @transform_0, window_bounds = array<i64: 1, 128>}, {pipeline_mode = #tpu.pipeline_mode<synchronous>, transform_indices = @transform_1, window_bounds = array<i64: 1, 128>}, {transform_indices = @transform_2, window_bounds = array<i64: 2, 128>}]} {
    %c2_i32 = arith.constant 2 : i32
    %0 = arith.muli %arg0, %c2_i32 : i32
    %1 = tpu.iota {dimensions = array<i32: 0>} : vector<2x128xi32>
    %2 = vector.broadcast %0 : i32 to vector<2x128xi32>
    %3 = arith.addi %1, %2 : vector<2x128xi32>
    %4 = arith.sitofp %3 : vector<2x128xi32> to vector<2x128xf32>
    %c0 = arith.constant 0 : index
    %c0_0 = arith.constant 0 : index
    %5 = vector.load %arg1[%c0, %c0_0] : memref<1x128xf32, #tpu.memory_space<vmem>>, vector<1x128xf32>
    %6 = vector.broadcast %5 : vector<1x128xf32> to vector<2x128xf32>
    %7 = arith.mulf %4, %6 : vector<2x128xf32>
    %c0_1 = arith.constant 0 : index
    %c0_2 = arith.constant 0 : index
    %8 = vector.load %arg2[%c0_1, %c0_2] : memref<1x128xf32, #tpu.memory_space<vmem>>, vector<1x128xf32>
    %9 = vector.broadcast %8 : vector<1x128xf32> to vector<2x128xf32>
    %10 = arith.addf %7, %9 : vector<2x128xf32>
    %c0_3 = arith.constant 0 : index
    %c0_4 = arith.constant 0 : index
    %11 = vector.load %arg3[%c0_3, %c0_4] : memref<2x128xf32, #tpu.memory_space<vmem>>, vector<2x128xf32>
    tpu.vector_store %arg3[%c0_3, %c0_4], %10 {strides = array<i32>} : memref<2x128xf32, #tpu.memory_space<vmem>>, vector<2x128xf32>,
    return
  }
  func.func @transform_0(%arg0: i32) -> (i32, i32) {
    %c0_i32 = arith.constant 0 : i32
    %c0_i32_0 = arith.constant 0 : i32
    %c0_i32_1 = arith.constant 0 : i32
    return %c0_i32, %c0_i32_0 : i32, i32
  }
  func.func @transform_1(%arg0: i32) -> (i32, i32) {
    %c0_i32 = arith.constant 0 : i32
    %c0_i32_0 = arith.constant 0 : i32
    %c0_i32_1 = arith.constant 0 : i32
    return %c0_i32, %c0_i32_0 : i32, i32
  }
  func.func @transform_2(%arg0: i32) -> (i32, i32) {
    %c0_i32 = arith.constant 0 : i32
    %c0_i32_0 = arith.constant 0 : i32
    return %arg0, %c0_i32 : i32, i32
  }
}

</mosaic_0001>

<bundles_post_ra>
// kernel: tpu_custom_call.1
= control target key start
LH: loop header
LB: loop body
LE: loop exit
PB: predicated region body
PF: predicated region fallthrough
CT: control target
= control target key end

     0   :  { %7 = vsyncpa [#allocation3], 0  ;;  %s158_s0 = inlined_call_operand.hbm [shape: f32[1,128], index: 0, kind: input, shape index: {}]   ;;  %s159_s1 = inlined_call_operand.vmem [shape: f32[1,128], index: 1, kind: input, shape index: {}]   ;;  %s160_s2 = inlined_call_operand.hbm [shape: f32[2,128], index: 2, kind: output, shape index: {}]  }
   0x1   :  { %8 = vsyncpa [#allocation4], 0  ;;  %s114_s9 = smov [#allocation2]   ;;  %s66_s13 = scalar_lea.hbm %s158_s0, 16 }
   0x2   :  { %s15_s10 = sshll.u32 %s114_s9, 4  ;;  %p67_p0 = scmp.ne.s32.totalorder %s158_s0, %s66_s13  ;;  %s16_s10 = int_to_ptr.vmem [resolvable:$true] %s15_s10 }
   0x3   :  { %p70_p1 = scmp.lt.u32.totalorder %s66_s13, %s158_s0 }
   0x5   :  { %p72_p2 = pnand %p70_p1, %p67_p0 }
   0x7   :  { %75 = shalt.err (!%p72_p2)
}
   0x8   :  { %s76_s18 = scalar_lea.vmem %s16_s10, 16  ;;  %s80_s19 = scalar_lea.vmem %s16_s10, 32 }
   0x9   :  { %p77_p3 = scmp.ne.s32.totalorder %s16_s10, %s76_s18  ;;  %p81_p4 = scmp.lt.s32.totalorder %s16_s10, %s16_s10 }
   0xa   :  { %p82_p5 = scmp.lt.s32.totalorder %s80_s19, %s76_s18 }
   0xc   :  { %p83_p6 = por %p82_p5, %p81_p4 }
   0xe   :  { %p84_p7 = pnand %p83_p6, %p77_p3 }
  0x10   :  { %87 = shalt.err (!%p84_p7)
}
  0x11   :  { %18 = dma.hbm_to_vmem [thread:$0]  %s158_s0, 16, %s16_s10, [#allocation3]  }
  0x12   :  { %110 = dma.done.wait [#allocation3], 16  }
  0x13   :  { %111 = vsyncadd [#allocation3], 4294967280  ;;  %v25_v0 = vlaneseq  ;;  %v62_v3 = vld [vmem:[#allocation2] ss:$0 sm:$0xff]  ;;  %s115_s24 = smov [#allocation5]  }
  0x14   :  { %v63_v4 = vld [vmem:[%s159_s1] ss:$0 sm:$0xff]  ;;  %s53_s25 = sshll.u32 %s115_s24, 4  ;;  %s54_s25 = int_to_ptr.vmem [resolvable:$true] %s53_s25 }
  0x15   :  { %v26_v1 = vshrl.u32 %v25_v0, 7  ;;  %s88_s26 = scalar_lea.vmem %s54_s25, 32  ;;  %p93_p9 = scmp.lt.s32.totalorder %s54_s25, %s54_s25 }
  0x16   :  { %p89_p8 = scmp.ne.s32.totalorder %s54_s25, %s88_s26  ;;  %p94_p10 = scmp.lt.s32.totalorder %s88_s26, %s88_s26 }
  0x17   :  { %v29_v2 = vcvt.s32.f32 %v26_v1 }
  0x18   :  { %p95_p11 = por %p94_p10, %p93_p9 }
  0x19   :  { %v37_v5 = vmul.f32 %v62_v3, %v29_v2 }
  0x1a   :  { %p96_p12 = pnand %p95_p11, %p89_p8 }
  0x1b   :  { %v45_v6 = vadd.f32 %v63_v4, %v37_v5 }
  0x1d   :  { %46 = vst [vmem:[#allocation5] sm:$0x3] %v45_v6 }
  0x1e   :  { %99 = shalt.err (!%p96_p12)
}
  0x1f   :  { %s100_s28 = scalar_lea.hbm %s160_s2, 32 }
  0x20   :  { %p101_p13 = scmp.ne.s32.totalorder %s160_s2, %s100_s28  ;;  %p104_p0 = scmp.lt.u32.totalorder %s100_s28, %s160_s2 }
  0x22   :  { %p106_p1 = pnand %p104_p0, %p101_p13 }
  0x24   :  { %109 = shalt.err (!%p106_p1)
}
  0x25   :  { %56 = dma.vmem_to_hbm [thread:$0]  %s54_s25, 32, %s160_s2, [#allocation4]  }
  0x26   :  { %112 = dma.done.wait [#allocation4], 32  }
  0x27   :  { %113 = vsyncadd [#allocation4], 4294967264 }
  0x28   :  { %60 = vsyncpa [#allocation3], 1 }
  0x29   :  { %61 = vsyncpa [#allocation4], 1 }

</bundles_post_ra>
